<compile_context>
chip_gen: v5e
topology: v5e:2x2
jax: 0.10.0
libtpu: 0.0.40
codegen_flags: <defaults>
</compile_context>

<pallas_src>
import functools

import jax
import jax.numpy as jnp
from jax.experimental import pallas as pl
from jax.experimental.pallas import tpu as pltpu


# ----------------------------------------------------------------------------
# Small helpers
# ----------------------------------------------------------------------------
def _round_up(n, m):
    return -(-n // m) * m


def _vmem_capacity_bytes():
    """Per-TensorCore VMEM capacity (conservative fallback: 64 MiB, v7x)."""
    cap = 0
    try:
        info = pltpu.get_tpu_info()
        cap = int(getattr(info, "vmem_capacity_bytes", 0) or 0)
    except Exception:
        cap = 0
    if cap <= 0:
        cap = 64 * 1024 * 1024
    # Clamp to 128 MiB; fractional budgets below keep us safe even if a
    # per-chip (2-TC) number is ever reported on v7x.
    return min(cap, 128 * 1024 * 1024)


def _padded_slab_bytes(bblk, C, T, itemsize):
    """VMEM bytes of a (bblk, C, T) buffer including (8,128) tile padding."""
    return bblk * _round_up(C, 8) * _round_up(max(T, 1), 128) * itemsize


def _pick_fused_bblk(B, C, T, itemsize, extra_bytes, budget):
    """Largest divisor of B whose fused footprint fits the budget, capped at
    B//2 when B >= 2 so the batch grid has >= 2 'parallel' steps (v7x megacore
    + DMA pipelining).  Returns None if even bblk=1 does not fit."""
    cap = B if B == 1 else B // 2
    for d in range(cap, 0, -1):
        if B % d:
            continue
        foot = (4 * _padded_slab_bytes(d, C, T, itemsize)      # in+out, 2x buffered
                + d * _round_up(C, 8) * 128 * 4                # chunk accumulator
                + extra_bytes)                                 # weights (buffered)
        if foot <= budget:
            return d
    return None


def _pick_t_tile(C, T, itemsize, n_buffers, budget, max_t_tile=None):
    """Lane-dense T tile for the two-pass path: a multiple of 128, never larger
    than T (so blocks never exceed the array), sized so that `n_buffers` copies
    fit the budget.  T <= 128 returns T (single full-dim tile)."""
    if T <= 128:
        return T
    cap = int(max_t_tile) if max_t_tile else 2048
    hi = max(128, min((T // 128) * 128, _round_up(cap, 128)))
    c_pad = _round_up(C, 8)
    tt = hi
    while tt > 128 and n_buffers * c_pad * tt * itemsize > budget:
        tt -= 128
    return tt


# ----------------------------------------------------------------------------
# In-kernel helpers
# ----------------------------------------------------------------------------
def _mean_over_t(x_ref, t_len):
    """Mean over the trailing T axis of a (bblk, C, t_len) ref, accumulating
    128-lane chunks in f32 (1 vadd per vreg, single cross-lane reduce)."""
    bblk, c = x_ref.shape[0], x_ref.shape[1]
    n_full = t_len // 128
    rem = t_len - n_full * 128
    if n_full > 0:
        def add_chunk(i, acc):
            off = pl.multiple_of(i * 128, 128)
            return acc + x_ref[:, :, pl.ds(off, 128)].astype(jnp.float32)
        acc = jax.lax.fori_loop(0, n_full, add_chunk,
                                jnp.zeros((bblk, c, 128), jnp.float32),
                                unroll=(n_full <= 16))
        s = jnp.sum(acc, axis=-1)
    else:
        s = jnp.zeros((bblk, c), jnp.float32)
    if rem > 0:
        s = s + jnp.sum(x_ref[:, :, pl.ds(n_full * 128, rem)].astype(jnp.float32),
                        axis=-1)
    return s * (1.0 / t_len)


def _excite(s, w1t_ref, w2t_ref):
    """g = sigmoid(W2 @ relu(W1 @ s)) with pre-transposed weights, f32 math."""
    h = jnp.maximum(jnp.dot(s, w1t_ref[...], preferred_element_type=jnp.float32), 0.0)
    return jax.nn.sigmoid(jnp.dot(h, w2t_ref[...], preferred_element_type=jnp.float32))


# ----------------------------------------------------------------------------
# Kernels
# ----------------------------------------------------------------------------
def _se_fused_kernel(x_ref, w1t_ref, w2t_ref, o_ref):
    """Single-pass SE: the whole (bblk, C, T) slab is resident in VMEM."""
    s = _mean_over_t(x_ref, x_ref.shape[2])                      # (bblk, C) f32
    g = _excite(s, w1t_ref, w2t_ref).astype(o_ref.dtype)         # (bblk, C)
    o_ref[...] = x_ref[...] * g[:, :, None]                      # lane splat


def _se_gate_kernel(x_ref, w1t_ref, w2t_ref, g_ref, acc_ref, *,
                    t_total, t_tile, need_mask):
    """Pass 1 of the fallback: squeeze (mean over T, tiled) + excitation gate.

    x_ref:   (bblk, C, t_tile) input tile (t axis is the 'arbitrary' grid axis)
    g_ref:   (bblk, C, 1)      gate output, resident across the t axis
    acc_ref: (bblk, C, 128)    f32 running chunk-sum scratch
    """
    t = pl.program_id(1)
    chunked = (t_tile % 128 == 0)   # guaranteed by the wrapper unless t_tile == T

    if chunked:
        @pl.when(t == 0)
        def _init():
            acc_ref[...] = jnp.zeros_like(acc_ref)

        n_chunks = t_tile // 128

        def add_chunk(i, acc):
            off = pl.multiple_of(i * 128, 128)
            chunk = x_ref[:, :, pl.ds(off, 128)].astype(jnp.float32)
            if need_mask:   # ragged last tile: zero the lanes past T
                lane = jax.lax.broadcasted_iota(jnp.int32, chunk.shape, 2)
                chunk = jnp.where(t * t_tile + off + lane < t_total, chunk, 0.0)
            return acc + chunk

        acc_ref[...] = jax.lax.fori_loop(0, n_chunks, add_chunk, acc_ref[...],
                                         unroll=True)

    @pl.when(t == pl.num_programs(1) - 1)
    def _finish():
        if chunked:
            s = jnp.sum(acc_ref[...], axis=-1)          # single XLU reduce
        else:
            # t_tile == T (single step, small/odd T): reduce directly.
            s = jnp.sum(x_ref[...].astype(jnp.float32), axis=-1)
        s = s * (1.0 / t_total)                          # mean_T
        g = _excite(s, w1t_ref, w2t_ref)
        g_ref[...] = g[:, :, None].astype(g_ref.dtype)   # (bblk, C, 1)


def _se_scale_kernel(x_ref, g_ref, o_ref):
    """Pass 2 of the fallback: out = x * g (broadcast over T), native dtype."""
    o_ref[...] = x_ref[...] * g_ref[...]                 # (.., C, 1) lane splat


# ----------------------------------------------------------------------------
# Wrapper
# ----------------------------------------------------------------------------
def prepare_se_params(w1, w2):
    """One-time parameter prep (do at init, NOT per forward call):
    w1: (Cr, C) -> (C, Cr), w2: (C, Cr) -> (Cr, C)."""
    return jnp.asarray(w1).T, jnp.asarray(w2).T


def se_module(x, w1t, w2t, *, force_two_pass=False, max_t_tile=None,
              donate_input=False):
    """x: (B, C, T); w1t: (C, Cr); w2t: (Cr, C). Returns (B, C, T).

    force_two_pass / max_t_tile exist for testing the tiled fallback path.
    donate_input=True adds input_output_aliases={0: 0} (only if x is dead
    after this call in the surrounding program)."""
    B, C, T = x.shape
    Cr = w1t.shape[-1]
    assert w1t.shape == (C, Cr) and w2t.shape == (Cr, C), \
        "pass weights through prepare_se_params()"

    itemsize = jnp.dtype(x.dtype).itemsize
    w_itemsize = jnp.dtype(w1t.dtype).itemsize

    cap = _vmem_capacity_bytes()
    # Scoped-VMEM limit and a conservative "fit" budget (headroom for Mosaic
    # internal scratch).  On v6e (128 MiB) this automatically raises the fusion
    # threshold; on v7x (64 MiB per TC) it shrinks it.
    vmem_limit = min(int(cap * 0.7), 100 * 1024 * 1024)
    fit_budget = int(vmem_limit * 0.6)
    w_bytes = 4 * C * Cr * w_itemsize            # both weights, double-buffered

    aliases = {0: 0} if donate_input else {}

    # ------------------ fused single-pass path (preferred) ------------------
    if not force_two_pass:
        bblk = _pick_fused_bblk(B, C, T, itemsize, w_bytes, fit_budget)
        if bblk is not None:
            nb = B // bblk
            return pl.pallas_call(
                _se_fused_kernel,
                out_shape=jax.ShapeDtypeStruct((B, C, T), x.dtype),
                grid_spec=pltpu.PrefetchScalarGridSpec(
                    num_scalar_prefetch=0,
                    grid=(nb,),
                    in_specs=[
                        pl.BlockSpec((bblk, C, T), lambda b: (b, 0, 0)),
                        pl.BlockSpec((C, Cr), lambda b: (0, 0)),
                        pl.BlockSpec((Cr, C), lambda b: (0, 0)),
                    ],
                    out_specs=pl.BlockSpec((bblk, C, T), lambda b: (b, 0, 0)),
                ),
                compiler_params=pltpu.CompilerParams(
                    dimension_semantics=("parallel",),
                    vmem_limit_bytes=vmem_limit,
                ),
                input_output_aliases=aliases,
            )(x, w1t, w2t)

    # ------------------------- two-pass fallback -----------------------------
    bblk = 1                     # (1, C, t_tile) blocks: no (8,128) hazard, and
    nb = B                       # the batch axis stays fully 'parallel'.

    # Pass 1 (gate): only the x tile is double-buffered -> ~2x larger tile.
    t_tile_g = _pick_t_tile(C, T, itemsize, n_buffers=2,
                            budget=fit_budget, max_t_tile=max_t_tile)
    nt_g = pl.cdiv(T, t_tile_g)
    need_mask = (T % t_tile_g) != 0

    gate = pl.pallas_call(
        functools.partial(_se_gate_kernel, t_total=T, t_tile=t_tile_g,
                          need_mask=need_mask),
        out_shape=jax.ShapeDtypeStruct((B, C, 1), x.dtype),
        grid_spec=pltpu.PrefetchScalarGridSpec(
            num_scalar_prefetch=0,
            grid=(nb, nt_g),
            in_specs=[
                pl.BlockSpec((bblk, C, t_tile_g), lambda b, t: (b, 0, t)),
                pl.BlockSpec((C, Cr), lambda b, t: (0, 0)),
                pl.BlockSpec((Cr, C), lambda b, t: (0, 0)),
            ],
            out_specs=pl.BlockSpec((bblk, C, 1), lambda b, t: (b, 0, 0)),
            scratch_shapes=[pltpu.VMEM((bblk, C, 128), jnp.float32)],
        ),
        compiler_params=pltpu.CompilerParams(
            dimension_semantics=("parallel", "arbitrary"),
            vmem_limit_bytes=vmem_limit,
        ),
    )(x, w1t, w2t)

    # Pass 2 (scale): x tile + out tile, both double-buffered.
    t_tile_s = _pick_t_tile(C, T, itemsize, n_buffers=4,
                            budget=fit_budget, max_t_tile=max_t_tile)
    nt_s = pl.cdiv(T, t_tile_s)

    out = pl.pallas_call(
        _se_scale_kernel,
        out_shape=jax.ShapeDtypeStruct((B, C, T), x.dtype),
        grid_spec=pltpu.PrefetchScalarGridSpec(
            num_scalar_prefetch=0,
            grid=(nb, nt_s),
            in_specs=[
                pl.BlockSpec((bblk, C, t_tile_s), lambda b, t: (b, 0, t)),
                pl.BlockSpec((bblk, C, 1), lambda b, t: (b, 0, 0)),
            ],
            out_specs=pl.BlockSpec((bblk, C, t_tile_s), lambda b, t: (b, 0, t)),
        ),
        compiler_params=pltpu.CompilerParams(
            dimension_semantics=("parallel", "parallel"),
            vmem_limit_bytes=vmem_limit,
        ),
        input_output_aliases=aliases,
    )(x, gate)
    return out


# ----------------------------------------------------------------------------
# Reference + tests
# ----------------------------------------------------------------------------
def se_reference(x, w1, w2):
    """Plain-JAX reference mirroring the PyTorch forward (w1: (Cr,C), w2: (C,Cr))."""
    s = jnp.mean(x, axis=-1)                      # (B, C)
    h = jnp.maximum(s @ w1.T, 0.0)                # (B, Cr)
    g = jax.nn.sigmoid(h @ w2.T)                  # (B, C)
    return x * g[:, :, None]


def _run_case(key, B, C, T, reduction, **kwargs):
    kx, k1, k2 = jax.random.split(key, 3)
    Cr = C // reduction
    x = jax.random.normal(kx, (B, C, T), dtype=jnp.float32)
    w1 = jax.random.normal(k1, (Cr, C), dtype=jnp.float32) * 0.5  # fc1 (Conv1d k=1)
    w2 = jax.random.normal(k2, (C, Cr), dtype=jnp.float32) * 0.5  # fc2 (Conv1d k=1)
    w1t, w2t = prepare_se_params(w1, w2)          # one-time, outside the hot path
    out = jax.block_until_ready(se_module(x, w1t, w2t, **kwargs))
    ref = se_reference(x, w1, w2)
    assert out.shape == (B, C, T)
    assert jnp.allclose(out, ref, atol=1e-5, rtol=1e-5), \
        f"mismatch vs reference (B={B}, C={C}, T={T}, kwargs={kwargs})"


if __name__ == "__main__":
    key = jax.random.PRNGKey(0)
    k1, k2, k3 = jax.random.split(key, 3)

    # Case 1: tiny shape consistent with the module (channels=4, reduction=2).
    # Exercises the fused single-pass path (slab trivially fits VMEM, nb=2).
    _run_case(k1, B=2, C=4, T=16, reduction=2)

    # Case 2: forced two-pass fallback with a multi-tile T reduction
    # (chunked f32 accumulation across grid steps) and a tiled scale pass.
    _run_case(k2, B=4, C=8, T=256, reduction=2,
              force_two_pass=True, max_t_tile=128)

    # Case 3: non-128-multiple T through the two-pass path (masked reduction,
    # ragged last tile clipped on the store side).
    _run_case(k3, B=2, C=8, T=200, reduction=2,
              force_two_pass=True, max_t_tile=128)

    print("KERNEL_OK")
</pallas_src>

<mosaic_0001>
module attributes {stable_mosaic.version = 11 : i64} {
  func.func @_se_fused_kernel(%arg0: i32, %arg1: memref<1x4x16xf32, #tpu.memory_space<vmem>>, %arg2: memref<4x2xf32, #tpu.memory_space<vmem>>, %arg3: memref<2x4xf32, #tpu.memory_space<vmem>>, %arg4: memref<1x4x16xf32, #tpu.memory_space<vmem>>) attributes {dimension_semantics = [#tpu.dimension_semantics<parallel>], iteration_bounds = array<i64: 2>, scalar_prefetch = 0 : i64, scratch_operands = 0 : i64, tpu.core_type = #tpu.core_type<tc>, window_params = [{transform_indices = @transform_0, window_bounds = array<i64: 1, 4, 16>}, {pipeline_mode = #tpu.pipeline_mode<synchronous>, transform_indices = @transform_1, window_bounds = array<i64: 4, 2>}, {pipeline_mode = #tpu.pipeline_mode<synchronous>, transform_indices = @transform_2, window_bounds = array<i64: 2, 4>}, {transform_indices = @transform_3, window_bounds = array<i64: 1, 4, 16>}]} {
    %cst = arith.constant 0.000000e+00 : f32
    %0 = vector.broadcast %cst : f32 to vector<1x4xf32>
    %c0 = arith.constant 0 : index
    %c0_0 = arith.constant 0 : index
    %c0_1 = arith.constant 0 : index
    %1 = vector.load %arg1[%c0, %c0_0, %c0_1] : memref<1x4x16xf32, #tpu.memory_space<vmem>>, vector<1x4x16xf32>
    %cst_2 = arith.constant dense<0.000000e+00> : vector<1x4xf32>
    %2 = vector.multi_reduction <add>, %1, %cst_2 [2] : vector<1x4x16xf32> to vector<1x4xf32>
    %3 = arith.addf %0, %2 : vector<1x4xf32>
    %cst_3 = arith.constant 6.250000e-02 : f32
    %4 = vector.broadcast %cst_3 : f32 to vector<1x4xf32>
    %5 = arith.mulf %3, %4 : vector<1x4xf32>
    %c0_4 = arith.constant 0 : index
    %c0_5 = arith.constant 0 : index
    %6 = vector.load %arg2[%c0_4, %c0_5] : memref<4x2xf32, #tpu.memory_space<vmem>>, vector<4x2xf32>
    %cst_6 = arith.constant dense<0.000000e+00> : vector<1x2xf32>
    %7 = tpu.matmul %5, %6, %cst_6 {dimension_numbers = #tpu.dot_dimension_numbers<[1], [0], [0], [1], [0, 0, 1, 1], [], []>} : vector<1x4xf32>, vector<4x2xf32>, vector<1x2xf32> -> vector<1x2xf32>
    %cst_7 = arith.constant 0.000000e+00 : f32
    %8 = vector.broadcast %cst_7 : f32 to vector<1x2xf32>
    %9 = arith.maximumf %7, %8 : vector<1x2xf32>
    %c0_8 = arith.constant 0 : index
    %c0_9 = arith.constant 0 : index
    %10 = vector.load %arg3[%c0_8, %c0_9] : memref<2x4xf32, #tpu.memory_space<vmem>>, vector<2x4xf32>
    %cst_10 = arith.constant dense<0.000000e+00> : vector<1x4xf32>
    %11 = tpu.matmul %9, %10, %cst_10 {dimension_numbers = #tpu.dot_dimension_numbers<[1], [0], [0], [1], [0, 0, 1, 1], [], []>} : vector<1x2xf32>, vector<2x4xf32>, vector<1x4xf32> -> vector<1x4xf32>
    %12 = arith.negf %11 : vector<1x4xf32>
    %13 = math.exp %12 : vector<1x4xf32>
    %cst_11 = arith.constant 1.000000e+00 : f32
    %14 = vector.broadcast %cst_11 : f32 to vector<1x4xf32>
    %15 = arith.addf %14, %13 : vector<1x4xf32>
    %16 = arith.divf %14, %15 : vector<1x4xf32>
    %c0_12 = arith.constant 0 : index
    %c0_13 = arith.constant 0 : index
    %c0_14 = arith.constant 0 : index
    %17 = vector.load %arg1[%c0_12, %c0_13, %c0_14] : memref<1x4x16xf32, #tpu.memory_space<vmem>>, vector<1x4x16xf32>
    %18 = vector.shape_cast %16 : vector<1x4xf32> to vector<1x4x1xf32>
    %19 = vector.broadcast %18 : vector<1x4x1xf32> to vector<1x4x16xf32>
    %20 = arith.mulf %17, %19 : vector<1x4x16xf32>
    %c0_15 = arith.constant 0 : index
    %c0_16 = arith.constant 0 : index
    %c0_17 = arith.constant 0 : index
    %21 = vector.load %arg4[%c0_15, %c0_16, %c0_17] : memref<1x4x16xf32, #tpu.memory_space<vmem>>, vector<1x4x16xf32>
    tpu.vector_store %arg4[%c0_15, %c0_16, %c0_17], %20 {strides = array<i32>} : memref<1x4x16xf32, #tpu.memory_space<vmem>>, vector<1x4x16xf32>,
    return
  }
  func.func @transform_0(%arg0: i32) -> (i32, i32, i32) {
    %c0_i32 = arith.constant 0 : i32
    %c0_i32_0 = arith.constant 0 : i32
    %c0_i32_1 = arith.constant 0 : i32
    return %arg0, %c0_i32, %c0_i32_0 : i32, i32, i32
  }
  func.func @transform_1(%arg0: i32) -> (i32, i32) {
    %c0_i32 = arith.constant 0 : i32
    %c0_i32_0 = arith.constant 0 : i32
    %c0_i32_1 = arith.constant 0 : i32
    return %c0_i32, %c0_i32_0 : i32, i32
  }
  func.func @transform_2(%arg0: i32) -> (i32, i32) {
    %c0_i32 = arith.constant 0 : i32
    %c0_i32_0 = arith.constant 0 : i32
    %c0_i32_1 = arith.constant 0 : i32
    return %c0_i32, %c0_i32_0 : i32, i32
  }
  func.func @transform_3(%arg0: i32) -> (i32, i32, i32) {
    %c0_i32 = arith.constant 0 : i32
    %c0_i32_0 = arith.constant 0 : i32
    %c0_i32_1 = arith.constant 0 : i32
    return %arg0, %c0_i32, %c0_i32_0 : i32, i32, i32
  }
}

</mosaic_0001>

<bundles_post_ra>
// kernel: tpu_custom_call.1
= control target key start
LH: loop header
LB: loop body
LE: loop exit
PB: predicated region body
PF: predicated region fallthrough
CT: control target
= control target key end

     0   :  { %8 = vsyncpa [#allocation3], 0  ;;  %s696_s0 = inlined_call_operand.hbm [shape: f32[2,4,16], index: 0, kind: input, shape index: {}]   ;;  %s697_s1 = inlined_call_operand.vmem [shape: f32[4,2], index: 1, kind: input, shape index: {}]   ;;  %s698_s2 = inlined_call_operand.vmem [shape: f32[2,4], index: 2, kind: input, shape index: {}]   ;;  %s699_s3 = inlined_call_operand.hbm [shape: f32[2,4,16], index: 3, kind: output, shape index: {}]  }
   0x1   :  { %10 = vsyncpa [#allocation3 + $0x1], 0 }
   0x2   :  { %11 = vsyncpa [#allocation4], 0 }
   0x3   :  { %13 = vsyncpa [#allocation4 + $0x1], 0  ;;  %s557_s12 = smov 0   ;;  %s559_s13 = smov 0  }
   0x4   :  { %s561_s14 = smov 0   ;;  %s563_s15 = smov 0  }
   0x5 LB: > { %s578_s16 = sadd.s32 4294967295, %s535_s15   ;;  %s371_s17 = sadd.s32 4294967294, %s535_s15   ;;  %s535_s15 = sphi %s563_s15, %s709_s15   ;;  %s531_s14 = sphi %s561_s14, %s708_s14   ;;  %s527_s13 = sphi %s559_s13, %s707_s13   ;;  %s523_s12 = sphi %s557_s12, %s706_s12  }
   0x6   : > { %s582_s18 = sadd.s32 1, %s535_s15   ;;  %s26_s19 = sadd.s32 1, %s531_s14 }
   0x7   : > { %s23_s20 = ssub.s32 %s535_s15, %s582_s18  ;;  %p33_p0 = scmp.ne.s32.totalorder %s531_s14, %s527_s13 }
   0x8   : > { %p24_p1 = scmp.eq.s32.totalorder %s23_s20, 0  ;;  %p34_p2 = scmp.eq.s32.totalorder %s535_s15, 0 }
   0x9   : > { %p39_p3 = scmp.ne.s32.totalorder %s527_s13, %s523_s12  ;;  %p40_p4 = scmp.eq.s32.totalorder %s578_s16, 0 }
   0xa   : > { %s594_s21 = scalar_select %p24_p1, %s531_s14, %s26_s19  }
   0xb   : > { %p596_p5 = por %p34_p2, %p33_p0  ;;  %p600_p6 = por %p40_p4, %p39_p3 }
   0xc   : > { %p105_p7 = scmp.eq.s32.totalorder %s578_s16, 1  ;;  %p111_p8 = scmp.eq.s32.totalorder %s371_s17, 1 }
   0xd   : > { %p400_p10 = scmp.lt.s32.totalorder %s535_s15, 2  ;;  %s137_s26 = sand.u32 1, %s531_s14  }
   0xe   : > { %p607_p11 = por %p105_p7, %p33_p0  ;;  %p611_p12 = por %p111_p8, %p39_p3 }
   0xf   : > { %s375_s27 = sshll.u32 %s535_s15, 2  ;;  %s374_s28 = sshll.u32 %s137_s26, 2 }
  0x10   : > { %s145_s4 = scalar_lea.hbm %s696_s0, %s375_s27  ;;  %s141_s6 = scalar_lea.vmem [#allocation2], %s374_s28 }
  0x11   : > { %s147_s5 = sshll.u32 %s145_s4, 4  ;;  %s149_s7 = sshll.u32 %s141_s6, 4  ;;  %s148_s5 = int_to_ptr.hbm [resolvable:$true] %s147_s5  ;;  %s150_s7 = int_to_ptr.vmem [resolvable:$true] %s149_s7 }
  0x12   : > { %p622_p13 = pnand %p400_p10, %p596_p5  ;;  %p376_p0 = scmp.ge.s32.totalorder %s535_s15, 1 }
  0x13   : > { %p154_p1 = scmp.lt.s32.totalorder %s535_s15, 3  ;;  %s138_s9 = scalar_lea.sflag [#allocation3], %s137_s26 }
  0x14   : > { %s439_s10 = sshra.s32 %s148_s5, 4  ;;  %p443_p3 = pneg %p622_p13  ;;  %s440_s10 = int_to_ptr.hbm [resolvable:$true] %s439_s10 }
  0x15   : > { %s441_s11 = scalar_lea.hbm %s440_s10, 4  ;;  %s446_s20 = scalar_lea.hbm %s696_s0, 8 }
  0x16   : > { %p442_p2 = scmp.ne.s32.totalorder %s440_s10, %s441_s11  ;;  %p447_p5 = scmp.lt.s32.totalorder %s440_s10, %s696_s0 }
  0x17   : > { %p448_p8 = scmp.lt.s32.totalorder %s446_s20, %s441_s11 }
  0x18   : > { %p444_p4 = pnand %p443_p3, %p442_p2 }
  0x19   : > { %p449_p10 = por %p448_p8, %p447_p5 }
  0x1a   : > { %p445_p7 = pneg %p444_p4 }
  0x1c   : > { %p450_p9 = pnand %p449_p10, %p445_p7 }
  0x1e   : > { %453 = shalt.err (!%p450_p9)
}
  0x1f   : > { %395 = dma.hbm_to_vmem [thread:$0]  (!%p622_p13), %s148_s5, 64, %s150_s7, %s138_s9  }
  0x20   : > { %p155_p2 = pnand %p376_p0, %p154_p1 }
  0x21   : > { %s643_s26 = sand.u32 (!%p155_p2), 1, %s527_s13  }
  0x22   : > { %158 = sbr.rel (%p155_p2) target bundleno = 566 (0x236), region = 32  ;;  %s377_s28 = sshll.u32 (!%p155_p2), %s643_s26, 2 }
  0x23   : > { %s161_s29 = scalar_lea.sflag (!%p155_p2), [#allocation3], %s643_s26  ;;  %s164_s30 = scalar_lea.vmem (!%p155_p2), [#allocation2], %s377_s28 }
  0x27   : > { %514 = dma.done.wait (%p600_p6), %s161_s29, 64  }
  0x28   : > { %516 = vsyncadd (%p600_p6), %s161_s29, 4294967232  ;;  %vm189_vm0 = vcmask 125952   ;;  %v188_v0 = vld [vmem:[%s164_s30] sm:$0xf]  ;;  %vm203_vm1 = vcmask 1043456   ;;  %v197_v3 = vlaneseq  ;;  %vm200_vm2 = vcmask 31744  }
  0x29   : > { %v190_v1 = vsel %vm189_vm0, %v188_v0, 0.0  ;;  %v195_v2 = vld [vmem:[%s697_s1] sm:$0xf]  ;;  %vm233_vm3 = vcmask 1041408   ;;  %vm229_vm4 = vcmask 15360   ;;  %s385_s7 = sshll.u32 %s578_s16, 2 }
  0x2a   : > { %191 = vadd.xlane.f32.xlu0 %v190_v1  ;;  %379 = vmatpush.msk.msra.mxu0 %vm203_vm1, %v195_v2  ;;  %v198_v4 = vand.u32 127, %v197_v3  ;;  %v228_v8 = vld [vmem:[%s698_s2] sm:$0x3]  ;;  %v278_v11 = vshrl.u32 %v197_v3, 7  ;;  %s296_s10 = scalar_lea.hbm %s699_s3, %s385_s7  ;;  %s187_s11 = scalar_lea.vmem [#allocation5], %s377_s28 }
  0x2b   : > { %381 = vmatpush.msk.msra.mxu1 %vm233_vm3, %v228_v8  ;;  %s298_s17 = sshll.u32 %s187_s11, 4  ;;  %s300_s19 = sshll.u32 %s296_s10, 4  ;;  %s299_s17 = int_to_ptr.vmem [resolvable:$true] %s298_s17  ;;  %s301_s19 = int_to_ptr.hbm [resolvable:$true] %s300_s19 }
  0x2c   : > { %434 = vset.pattern.permute.xlu0 %v278_v11  ;;  %s286_s20 = scalar_lea.sflag [#allocation4], %s643_s26  ;;  %s483_s22 = sshra.s32 %s301_s19, 4  ;;  %s484_s22 = int_to_ptr.hbm [resolvable:$true] %s483_s22 }
  0x2d   : > { %s485_s27 = scalar_lea.hbm %s484_s22, 4  ;;  %s489_s28 = scalar_lea.hbm %s699_s3, 8 }
  0x2e   : > { %p486_p6 = scmp.ne.s32.totalorder %s484_s22, %s485_s27  ;;  %p490_p0 = scmp.lt.s32.totalorder %s484_s22, %s699_s3 }
  0x2f   : > { %p491_p1 = scmp.lt.s32.totalorder %s489_s28, %s485_s27 }
  0x30   : > { %p487_p9 = pnand %p486_p6, %p607_p11 }
  0x31   : > { %p492_p3 = por %p491_p1, %p490_p0 }
  0x32   : > { %p488_p13 = pneg %p487_p9 }
  0x34   : > { %p493_p4 = pnand %p492_p3, %p488_p13 }
  0x9d   : > { %v192_v5 = vpop.xlane.xlu0 %191 }
  0x9e   : > { %v194_v6 = vmul.f32 0.0625, %v192_v5 }
  0xa0   : > { %v199_v7 = vperm.slane %v194_v6, %v198_v4 }
  0xa2   : > { %380 = vmatmul.msk.f32.vlgmr.msra.gmra.mxu0 %vm200_vm2, %v199_v7 }
 0x11f   : > { %v224_v9 = vpop.f32.mrf.mxu0 }
 0x120   : > { %v227_v10 = vmax.f32 %v224_v9, 0.0 }
 0x122   : > { %382 = vmatmul.msk.f32.vlgmr.msra.gmra.mxu1 %vm229_vm4, %v227_v10 }
 0x19f   : > { %v254_v12 = vpop.f32.mrf.mxu1 }
 0x1a0   : > { %v383_v13 = vmul.f32 -1.442695, %v254_v12 }
 0x1a2   : > { %435 = vpow2.f32 %v383_v13 }
 0x1a8   : > { %v436_v14 = vpop.eup %435 }
 0x1a9   : > { %v260_v15 = vadd.f32 1.0, %v436_v14 }
 0x1ab   : > { %437 = vrcp.f32 %v260_v15  ;;  %v272_v19 = vand.u32 2147483648, %v260_v15  ;;  %v270_v21 = vand.u32 2147483647, %v260_v15  ;;  %vm266_vm6 = vweird.f32 %v260_v15 }
 0x1ad   : > { %v273_v23 = vor.u32 1.1754944e-38, %v272_v19  ;;  %vm271_vm8 = vcmp.eq.f32.partialorder %v270_v21, 8.507059e+37 }
 0x1b1   : > { %v438_v16 = vpop.eup %437 }
 0x1b2   : > { %v262_v17 = vmul.f32 %v438_v16, %v260_v15  ;;  %vm267_vm5 = vweird.f32 %v438_v16 }
 0x1b3   : > { %vm268_vm7 = vmor %vm266_vm6, %vm267_vm5 }
 0x1b4   : > { %v263_v18 = vsub.f32 1.0, %v262_v17 }
 0x1b6   : > { %v264_v20 = vmul.f32 %v438_v16, %v263_v18 }
 0x1b8   : > { %v265_v22 = vadd.f32 %v438_v16, %v264_v20 }
 0x1ba   : > { %v269_v24 = vsel %vm268_vm7, %v438_v16, %v265_v22 }
 0x1bb   : > { %v274_v25 = vsel %vm271_vm8, %v273_v23, %v269_v24 }
 0x1bc   : > { %v276_v26 = vperm.slane %v274_v25, 0 }
 0x1be   : > { %281 = vperm.xlu0 %434, %v276_v26  }
 0x230   : > { %v282_v27 = vpop.permute.xlu0 %281 }
 0x231   : > { %v283_v28 = vmul.f32 %v282_v27, %v188_v0 }
 0x233   : > { %284 = vst.msk [vmem:[%s187_s11] sm:$0xf] %vm189_vm0, %v283_v28 }
 0x234   : > { %496 = shalt.err (!%p493_p4)
}
 0x235   : > { %390 = dma.vmem_to_hbm [thread:$0]  (%p607_p11), %s299_s17, 64, %s301_s19, %s286_s20  }
 0x236 PF: > { %s312_s26 = sand.u32 1, %s523_s12   ;;  %p705_p7 = scmp.ge.s32.totalorder %s535_s15, 2 }
 0x237   : > { %s313_s5 = scalar_lea.sflag [#allocation4], %s312_s26 }
 0x238   : > { %p397_p5 = pnand %p705_p7, %p611_p12 }
 0x23a   : > { %p398_p8 = pneg %p397_p5 }
 0x23c   : > { %518 = dma.done.wait (%p398_p8), %s313_s5, 64  }
 0x23d   : > { %520 = vsyncadd (%p398_p8), %s313_s5, 4294967232  ;;  %p16_p10 = scmp.ge.s32.totalorder %s582_s18, 4   ;;  %s706_s12 = smov %s527_s13 }
 0x23e   : > { %s707_s13 = smov %s531_s14  ;;  %s708_s14 = smov %s594_s21 }
 0x23f   : > { %s709_s15 = smov %s582_s18  ;;  %18 = sbr.rel (!%p16_p10) target bundleno = 5 (0x5), region = 77 }
 0x244   :  { %319 = vsyncpa [#allocation3], 1 }
 0x245   :  { %321 = vsyncpa [#allocation3 + $0x1], 1 }
 0x246   :  { %322 = vsyncpa [#allocation4], 1 }
 0x247   :  { %324 = vsyncpa [#allocation4 + $0x1], 1 }

</bundles_post_ra>
